<compile_context>
chip_gen: v7x
topology: tpu7x:2x2x1
jax: 0.10.0
libtpu: 0.0.40
codegen_flags: <defaults>
</compile_context>

<pallas_src>
import functools

import jax
import jax.numpy as jnp
from jax.experimental import pallas as pl
from jax.experimental.pallas import tpu as pltpu


def _blob_mlp_kernel(xt_ref, w1_ref, b1_ref, w2_ref, b2_ref, w3_ref, b3_ref,
                     ot_ref):
    """Fused transposed MLP: ot = W3 @ relu(W2 @ relu(W1 @ xt + b1) + b2) + b3.

    All refs are (features, lanes): xt (in, TILE_B), weights (out, in),
    biases (out, 1), ot (out_classes, TILE_B).  Batch is lane-dense.
    """
    xt = xt_ref[...]

    # Layer 1: (hidden, in) @ (in, TILE_B) -> (hidden, TILE_B), f32 accumulate.
    h1 = jnp.dot(w1_ref[...], xt, preferred_element_type=jnp.float32)
    h1 = jnp.maximum(h1 + b1_ref[...], 0.0)          # bias (hidden,1) bcast

    # Layer 2: (hidden, hidden) @ (hidden, TILE_B).
    h2 = jnp.dot(w2_ref[...], h1.astype(w2_ref.dtype),
                 preferred_element_type=jnp.float32)
    h2 = jnp.maximum(h2 + b2_ref[...], 0.0)

    # Layer 3 (logits): (classes, hidden) @ (hidden, TILE_B).
    out = jnp.dot(w3_ref[...], h2.astype(w3_ref.dtype),
                  preferred_element_type=jnp.float32)
    out = out + b3_ref[...]

    ot_ref[...] = out.astype(ot_ref.dtype)


def _round_up(n, m):
    return ((n + m - 1) // m) * m


@functools.partial(jax.jit, static_argnames=("tile_b",))
def _blob_forward_padded(xt, w1, b1, w2, b2, w3, b3, *, tile_b):
    """xt: (in_features, padded_batch); returns (out_features, padded_batch)."""
    in_features, padded_b = xt.shape
    out_features = w3.shape[0]
    grid = (padded_b // tile_b,)

    # Weights / biases: same (only) block for every grid step -> VMEM-resident,
    # fetched once, never re-DMA'd.
    resident = lambda a: pl.BlockSpec(a.shape, lambda i: (0, 0))

    return pl.pallas_call(
        _blob_mlp_kernel,
        out_shape=jax.ShapeDtypeStruct((out_features, padded_b), jnp.float32),
        grid=grid,
        in_specs=[
            # Activations: tiled along the lane-dense batch axis (pipelined).
            pl.BlockSpec((in_features, tile_b), lambda i: (0, i)),
            resident(w1), resident(b1),
            resident(w2), resident(b2),
            resident(w3), resident(b3),
        ],
        out_specs=pl.BlockSpec((out_features, tile_b), lambda i: (0, i)),
        compiler_params=pltpu.CompilerParams(
            # Batch tiles are independent -> megacore-shardable on v7x.
            dimension_semantics=("parallel",),
        ),
    )(xt, w1, b1, w2, b2, w3, b3)


def blob_model_forward(x, w1, b1, w2, b2, w3, b3, *,
                       compute_dtype=jnp.float32, max_tile_b=2048):
    """BlobModel forward.

    x: (batch, input_features) f32.
    Weights in PyTorch nn.Linear layout: w (out, in), b (out, 1).
    compute_dtype: jnp.float32 or jnp.bfloat16 for x / weights (accumulation
    and bias/ReLU epilogue stay in f32 either way).
    Returns (batch, output_features) f32 logits.
    """
    batch, in_features = x.shape

    # Batch goes on the lane axis: pad it to a multiple of 128 (>=128) and
    # pick a lane-tile.  Per-row VMEM cost is tiny (~24 B), so a large tile
    # amortizes per-grid-step overhead; 2048 rows double-buffered is << the
    # 32 MiB scoped VMEM default on any generation (incl. v7x's 64 MiB chip).
    padded_b = _round_up(max(batch, 128), 128)
    tile_b = min(max_tile_b, padded_b)
    padded_b = _round_up(padded_b, tile_b)

    # Layout plumbing in the wrapper: transpose + zero-pad the batch axis.
    xt = jnp.zeros((in_features, padded_b), compute_dtype)
    xt = xt.at[:, :batch].set(x.T.astype(compute_dtype))

    w1c = w1.astype(compute_dtype)
    w2c = w2.astype(compute_dtype)
    w3c = w3.astype(compute_dtype)
    # Biases stay f32 (epilogue is f32 on every generation, incl. v5e's
    # f32-only VPU).
    out_t = _blob_forward_padded(xt, w1c, b1, w2c, b2, w3c, b3, tile_b=tile_b)

    return out_t[:, :batch].T


def init_blob_params(key, input_features, output_features, hidden_units=8):
    """Deterministic init matching nn.Linear (weight [out, in], bias [out, 1])."""
    ks = jax.random.split(key, 6)

    def linear_params(kw, kb, fan_in, fan_out):
        bound = 1.0 / jnp.sqrt(fan_in)
        w = jax.random.uniform(kw, (fan_out, fan_in), jnp.float32,
                               minval=-bound, maxval=bound)
        b = jax.random.uniform(kb, (fan_out, 1), jnp.float32,
                               minval=-bound, maxval=bound)
        return w, b

    w1, b1 = linear_params(ks[0], ks[1], input_features, hidden_units)
    w2, b2 = linear_params(ks[2], ks[3], hidden_units, hidden_units)
    w3, b3 = linear_params(ks[4], ks[5], hidden_units, output_features)
    return w1, b1, w2, b2, w3, b3


def reference_forward(x, w1, b1, w2, b2, w3, b3):
    h = jnp.maximum(x @ w1.T + b1.T, 0.0)
    h = jnp.maximum(h @ w2.T + b2.T, 0.0)
    return h @ w3.T + b3.T


if __name__ == "__main__":
    # Typical "blob" multiclass setup: 2 input features, 4 classes, hidden=8.
    batch = 8
    input_features = 2
    output_features = 4
    hidden_units = 8

    key = jax.random.PRNGKey(0)
    k_x, k_p = jax.random.split(key)

    x = jax.random.normal(k_x, (batch, input_features), jnp.float32)
    params = init_blob_params(k_p, input_features, output_features,
                              hidden_units)

    # f32 path (exact vs reference).
    out = blob_model_forward(x, *params)
    jax.block_until_ready(out)
    ref = reference_forward(x, *params)
    assert out.shape == (batch, output_features)
    assert jnp.allclose(out, ref, atol=1e-5, rtol=1e-5), "f32 mismatch vs ref"

    # bf16 x/weights path (halves HBM bytes at scale); f32 accumulation keeps
    # it close, but tolerance is relaxed accordingly.
    out_bf16 = blob_model_forward(x, *params, compute_dtype=jnp.bfloat16)
    jax.block_until_ready(out_bf16)
    assert out_bf16.shape == (batch, output_features)
    assert jnp.allclose(out_bf16, ref, atol=3e-2, rtol=3e-2), "bf16 mismatch"

    print("KERNEL_OK")
</pallas_src>

<mosaic_0001>
module attributes {stable_mosaic.version = 11 : i64} {
  func.func @_blob_mlp_kernel(%arg0: i32, %arg1: memref<2x128xf32, #tpu.memory_space<vmem>>, %arg2: memref<8x2xf32, #tpu.memory_space<vmem>>, %arg3: memref<8x1xf32, #tpu.memory_space<vmem>>, %arg4: memref<8x8xf32, #tpu.memory_space<vmem>>, %arg5: memref<8x1xf32, #tpu.memory_space<vmem>>, %arg6: memref<4x8xf32, #tpu.memory_space<vmem>>, %arg7: memref<4x1xf32, #tpu.memory_space<vmem>>, %arg8: memref<4x128xf32, #tpu.memory_space<vmem>>) attributes {dimension_semantics = [#tpu.dimension_semantics<parallel>], iteration_bounds = array<i64: 1>, scalar_prefetch = 0 : i64, scratch_operands = 0 : i64, tpu.core_type = #tpu.core_type<tc>, window_params = [{transform_indices = @transform_0, window_bounds = array<i64: 2, 128>}, {pipeline_mode = #tpu.pipeline_mode<synchronous>, transform_indices = @transform_1, window_bounds = array<i64: 8, 2>}, {pipeline_mode = #tpu.pipeline_mode<synchronous>, transform_indices = @transform_2, window_bounds = array<i64: 8, 1>}, {pipeline_mode = #tpu.pipeline_mode<synchronous>, transform_indices = @transform_3, window_bounds = array<i64: 8, 8>}, {pipeline_mode = #tpu.pipeline_mode<synchronous>, transform_indices = @transform_4, window_bounds = array<i64: 8, 1>}, {pipeline_mode = #tpu.pipeline_mode<synchronous>, transform_indices = @transform_5, window_bounds = array<i64: 4, 8>}, {pipeline_mode = #tpu.pipeline_mode<synchronous>, transform_indices = @transform_6, window_bounds = array<i64: 4, 1>}, {transform_indices = @transform_7, window_bounds = array<i64: 4, 128>}]} {
    %c0 = arith.constant 0 : index
    %c0_0 = arith.constant 0 : index
    %0 = vector.load %arg1[%c0, %c0_0] : memref<2x128xf32, #tpu.memory_space<vmem>>, vector<2x128xf32>
    %c0_1 = arith.constant 0 : index
    %c0_2 = arith.constant 0 : index
    %1 = vector.load %arg2[%c0_1, %c0_2] : memref<8x2xf32, #tpu.memory_space<vmem>>, vector<8x2xf32>
    %cst = arith.constant dense<0.000000e+00> : vector<8x128xf32>
    %2 = tpu.matmul %1, %0, %cst {dimension_numbers = #tpu.dot_dimension_numbers<[1], [0], [0], [1], [0, 0, 1, 1], [], []>} : vector<8x2xf32>, vector<2x128xf32>, vector<8x128xf32> -> vector<8x128xf32>
    %c0_3 = arith.constant 0 : index
    %c0_4 = arith.constant 0 : index
    %3 = vector.load %arg3[%c0_3, %c0_4] : memref<8x1xf32, #tpu.memory_space<vmem>>, vector<8x1xf32>
    %4 = vector.broadcast %3 : vector<8x1xf32> to vector<8x128xf32>
    %5 = arith.addf %2, %4 : vector<8x128xf32>
    %cst_5 = arith.constant 0.000000e+00 : f32
    %6 = vector.broadcast %cst_5 : f32 to vector<8x128xf32>
    %7 = arith.maximumf %5, %6 : vector<8x128xf32>
    %c0_6 = arith.constant 0 : index
    %c0_7 = arith.constant 0 : index
    %8 = vector.load %arg4[%c0_6, %c0_7] : memref<8x8xf32, #tpu.memory_space<vmem>>, vector<8x8xf32>
    %cst_8 = arith.constant dense<0.000000e+00> : vector<8x128xf32>
    %9 = tpu.matmul %8, %7, %cst_8 {dimension_numbers = #tpu.dot_dimension_numbers<[1], [0], [0], [1], [0, 0, 1, 1], [], []>} : vector<8x8xf32>, vector<8x128xf32>, vector<8x128xf32> -> vector<8x128xf32>
    %c0_9 = arith.constant 0 : index
    %c0_10 = arith.constant 0 : index
    %10 = vector.load %arg5[%c0_9, %c0_10] : memref<8x1xf32, #tpu.memory_space<vmem>>, vector<8x1xf32>
    %11 = vector.broadcast %10 : vector<8x1xf32> to vector<8x128xf32>
    %12 = arith.addf %9, %11 : vector<8x128xf32>
    %cst_11 = arith.constant 0.000000e+00 : f32
    %13 = vector.broadcast %cst_11 : f32 to vector<8x128xf32>
    %14 = arith.maximumf %12, %13 : vector<8x128xf32>
    %c0_12 = arith.constant 0 : index
    %c0_13 = arith.constant 0 : index
    %15 = vector.load %arg6[%c0_12, %c0_13] : memref<4x8xf32, #tpu.memory_space<vmem>>, vector<4x8xf32>
    %cst_14 = arith.constant dense<0.000000e+00> : vector<4x128xf32>
    %16 = tpu.matmul %15, %14, %cst_14 {dimension_numbers = #tpu.dot_dimension_numbers<[1], [0], [0], [1], [0, 0, 1, 1], [], []>} : vector<4x8xf32>, vector<8x128xf32>, vector<4x128xf32> -> vector<4x128xf32>
    %c0_15 = arith.constant 0 : index
    %c0_16 = arith.constant 0 : index
    %17 = vector.load %arg7[%c0_15, %c0_16] : memref<4x1xf32, #tpu.memory_space<vmem>>, vector<4x1xf32>
    %18 = vector.broadcast %17 : vector<4x1xf32> to vector<4x128xf32>
    %19 = arith.addf %16, %18 : vector<4x128xf32>
    %c0_17 = arith.constant 0 : index
    %c0_18 = arith.constant 0 : index
    %20 = vector.load %arg8[%c0_17, %c0_18] : memref<4x128xf32, #tpu.memory_space<vmem>>, vector<4x128xf32>
    tpu.vector_store %arg8[%c0_17, %c0_18], %19 {strides = array<i32>} : memref<4x128xf32, #tpu.memory_space<vmem>>, vector<4x128xf32>,
    return
  }
  func.func @transform_0(%arg0: i32) -> (i32, i32) {
    %c0_i32 = arith.constant 0 : i32
    %c0_i32_0 = arith.constant 0 : i32
    return %c0_i32, %arg0 : i32, i32
  }
  func.func @transform_1(%arg0: i32) -> (i32, i32) {
    %c0_i32 = arith.constant 0 : i32
    %c0_i32_0 = arith.constant 0 : i32
    %c0_i32_1 = arith.constant 0 : i32
    return %c0_i32, %c0_i32_0 : i32, i32
  }
  func.func @transform_2(%arg0: i32) -> (i32, i32) {
    %c0_i32 = arith.constant 0 : i32
    %c0_i32_0 = arith.constant 0 : i32
    %c0_i32_1 = arith.constant 0 : i32
    return %c0_i32, %c0_i32_0 : i32, i32
  }
  func.func @transform_3(%arg0: i32) -> (i32, i32) {
    %c0_i32 = arith.constant 0 : i32
    %c0_i32_0 = arith.constant 0 : i32
    %c0_i32_1 = arith.constant 0 : i32
    return %c0_i32, %c0_i32_0 : i32, i32
  }
  func.func @transform_4(%arg0: i32) -> (i32, i32) {
    %c0_i32 = arith.constant 0 : i32
    %c0_i32_0 = arith.constant 0 : i32
    %c0_i32_1 = arith.constant 0 : i32
    return %c0_i32, %c0_i32_0 : i32, i32
  }
  func.func @transform_5(%arg0: i32) -> (i32, i32) {
    %c0_i32 = arith.constant 0 : i32
    %c0_i32_0 = arith.constant 0 : i32
    %c0_i32_1 = arith.constant 0 : i32
    return %c0_i32, %c0_i32_0 : i32, i32
  }
  func.func @transform_6(%arg0: i32) -> (i32, i32) {
    %c0_i32 = arith.constant 0 : i32
    %c0_i32_0 = arith.constant 0 : i32
    %c0_i32_1 = arith.constant 0 : i32
    return %c0_i32, %c0_i32_0 : i32, i32
  }
  func.func @transform_7(%arg0: i32) -> (i32, i32) {
    %c0_i32 = arith.constant 0 : i32
    %c0_i32_0 = arith.constant 0 : i32
    return %c0_i32, %arg0 : i32, i32
  }
}

</mosaic_0001>

<bundles_post_ra>
// kernel: _blob_forward_padded.1
= control target key start
LH: loop header
LB: loop body
LE: loop exit
PB: predicated region body
PF: predicated region fallthrough
CT: control target
= control target key end

     0   :  { %vm39_vm0 = vcmask 1041408   ;;  %v346_v2 = vmov 0.0   ;;  %vm347_vm1 = vmmov 0   ;;  %vm35_vm2 = vcmask 15360   ;;  %s423_s0 = inlined_call_operand.vmem [shape: f32[2,128], index: 0, kind: input, shape index: {}]   ;;  %s424_s1 = inlined_call_operand.vmem [shape: f32[8,2], index: 1, kind: input, shape index: {}]   ;;  %s425_s2 = inlined_call_operand.vmem [shape: f32[8,1], index: 2, kind: input, shape index: {}]   ;;  %s426_s3 = inlined_call_operand.vmem [shape: f32[8,8], index: 3, kind: input, shape index: {}]   ;;  %s427_s4 = inlined_call_operand.vmem [shape: f32[8,1], index: 4, kind: input, shape index: {}]   ;;  %s428_s5 = inlined_call_operand.vmem [shape: f32[4,8], index: 5, kind: input, shape index: {}]   ;;  %s429_s6 = inlined_call_operand.vmem [shape: f32[4,1], index: 6, kind: input, shape index: {}]   ;;  %s430_s7 = inlined_call_operand.hbm [shape: f32[4,128], index: 7, kind: output, shape index: {}]  }
   0x1   :  { %v27_v0 = vld [vmem:[%s423_s0] sm:$0x3]  ;;  %301 = vmatprep.subr.mxu0 %v346_v2  ;;  %303 = vmatprep.mubr.msk.f32.mxu0 %vm347_vm1, %v346_v2 }
   0x2   :  { %v28_v1 = vld [vmem:[%s424_s1] sm:$0xff] }
   0x3   :  { %v29_v3 = vld [vmem:[%s425_s2] sm:$0xff] }
   0x4   :  { %12 = vsyncpa [#allocation3], 0  ;;  %302 = vmatpush3.msk.msra.mxu0 %vm39_vm0, %v27_v0  ;;  %v348_v4 = vmov 0   ;;  %v115_v5 = vld [vmem:[%s427_s4] sm:$0xff]  ;;  %306 = vmatprep.subr.mxu1 %v346_v2  ;;  %vm121_vm3 = vcmask 64512  }
   0x5   :  { %320 = vset.pattern.permute.xlu0 %v348_v4  ;;  %304 = vmatmul.mubr.msk.f32.vlgmr.msra.gmra.mrb[0].mxu0 %vm35_vm2, %v28_v1  ;;  %v114_v11 = vld [vmem:[%s426_s3] sm:$0xff]  ;;  %s349_s3 = smov [#allocation2]  }
   0x6   :  { %32 = vperm.xlu0 %320, %v29_v3   ;;  %308 = vmatprep.mubr.msk.f32.mxu1 %vm347_vm1, %v346_v2  ;;  %v197_v12 = vld [vmem:[%s429_s6] sm:$0xf]  ;;  %s283_s11 = sshll.u32 %s349_s3, 4  ;;  %s284_s11 = int_to_ptr.vmem [resolvable:$true] %s283_s11 }
   0x7   :  { %311 = vmatprep.subr.mxu0 %v346_v2  ;;  %313 = vmatprep.mubr.msk.f32.mxu0 %vm347_vm1, %v346_v2  ;;  %v196_v18 = vld [vmem:[%s428_s5] sm:$0xf]  ;;  %s322_s6 = scalar_lea.vmem %s284_s11, 64  ;;  %p327_p1 = scmp.lt.s32.totalorder %s284_s11, %s284_s11 }
   0x8   :  { %321 = vset.pattern.permute.xlu1 %v348_v4  ;;  %p323_p0 = scmp.ne.s32.totalorder %s284_s11, %s322_s6  ;;  %p328_p2 = scmp.lt.s32.totalorder %s322_s6, %s322_s6 }
   0x9   :  { %200 = vperm.xlu1 %321, %v197_v12  }
   0xa   :  { %118 = vperm.xlu0 %320, %v115_v5   ;;  %p329_p3 = por %p328_p2, %p327_p1 }
   0xc   :  { %p330_p4 = pnand %p329_p3, %p323_p0 }
  0x85   :  { %v33_v6 = vpop.permute.xlu0 %32 }
  0x88   :  { %v201_v19 = vpop.permute.xlu1 %200 }
  0x89   :  { %v119_v13 = vpop.permute.xlu0 %118 }
  0xd8   :  { %v109_v7 = vpop.f32.mrb[0].mxu0 }
  0xd9   :  { %v110_v8 = vadd.f32 %v109_v7, %v33_v6  ;;  %v305_v9 = vpop.f32.mrb[1].mxu0 }
  0xdb   :  { %v113_v10 = vmax.f32 %v110_v8, 0.0 }
  0xdd   :  { %307 = vmatpush3.msra.mxu1 %v113_v10 }
  0xde   :  { %309 = vmatmul.mubr.msk.f32.vlgmr.msra.gmra.mrb[0].mxu1 %vm121_vm3, %v114_v11 }
 0x1b1   :  { %v191_v14 = vpop.f32.mrb[0].mxu1 }
 0x1b2   :  { %v192_v15 = vadd.f32 %v191_v14, %v119_v13  ;;  %v310_v16 = vpop.f32.mrb[1].mxu1 }
 0x1b4   :  { %v195_v17 = vmax.f32 %v192_v15, 0.0 }
 0x1b6   :  { %312 = vmatpush3.msra.mxu0 %v195_v17 }
 0x1b7   :  { %314 = vmatmul.mubr.msk.f32.vlgmr.msra.gmra.mrb[2].mxu0 %vm121_vm3, %v196_v18 }
 0x28a   :  { %v272_v20 = vpop.f32.mrb[2].mxu0 }
 0x28b   :  { %v273_v21 = vadd.f32 %v272_v20, %v201_v19  ;;  %v315_v22 = vpop.f32.mrb[3].mxu0 }
 0x28d   :  { %276 = vst [vmem:[#allocation2] sm:$0xf] %v273_v21 }
 0x28e   :  { %333 = shalt.err (!%p330_p4)
}
 0x28f   :  { %s334_s5 = scalar_lea.hbm %s430_s7, 64 }
 0x290   :  { %p335_p5 = scmp.ne.s32.totalorder %s430_s7, %s334_s5  ;;  %p338_p6 = scmp.lt.u32.totalorder %s334_s5, %s430_s7 }
 0x292   :  { %p340_p7 = pnand %p338_p6, %p335_p5 }
 0x294   :  { %343 = shalt.err (!%p340_p7)
}
 0x295   :  { %286 = dma.vmem_to_hbm [thread:$0]  %s284_s11, 64, %s430_s7, [#allocation3]  }
 0x296   :  { %344 = dma.done.wait [#allocation3], 64  }
 0x297   :  { %345 = vsyncadd [#allocation3], 4294967232 }
 0x298   :  { %290 = vsyncpa [#allocation3], 1 }

</bundles_post_ra>
